<compile_context>
chip_gen: v7x
topology: tpu7x:2x2x1
jax: 0.10.0
libtpu: 0.0.40
codegen_flags: <defaults>
</compile_context>

<pallas_src>
import jax
import jax.numpy as jnp
from jax.experimental import pallas as pl
from jax.experimental.pallas import tpu as pltpu


STATE_SIZE = 6       # Acrobot-v1 observation dim
ACTION_SIZE = 3      # Acrobot-v1 action dim
H1, H2, H3 = 256, 256, 128

OUT_PAD = 128                      # lane-dense output width (cols >= 3 are exactly 0)
B_TOTAL = H1 + H2 + H3 + OUT_PAD   # 768; every bias slice offset is lane-aligned


def _round_up(x, m):
    return ((x + m - 1) // m) * m


def qnetwork_kernel(x_ref, w1_ref, w2_ref, w3_ref, w4_ref, b_ref, out_ref):
    """Fused 4-layer MLP: bf16 MXU inputs, f32 accumulation + f32 VPU math."""
    # No-op if the caller already stores replay states in bf16; a (tile, 6)
    # cast otherwise (negligible).
    x = x_ref[...].astype(jnp.bfloat16)

    # Single coalesced bias operand, statically sliced at 128-aligned offsets.
    b1 = b_ref[:, 0:H1]
    b2 = b_ref[:, H1:H1 + H2]
    b3 = b_ref[:, H1 + H2:H1 + H2 + H3]
    b4 = b_ref[:, H1 + H2 + H3:B_TOTAL]

    h1 = jnp.maximum(
        jnp.dot(x, w1_ref[...], preferred_element_type=jnp.float32) + b1, 0.0)
    h2 = jnp.maximum(
        jnp.dot(h1.astype(jnp.bfloat16), w2_ref[...],
                preferred_element_type=jnp.float32) + b2, 0.0)
    h3 = jnp.maximum(
        jnp.dot(h2.astype(jnp.bfloat16), w3_ref[...],
                preferred_element_type=jnp.float32) + b3, 0.0)
    out = jnp.dot(h3.astype(jnp.bfloat16), w4_ref[...],
                  preferred_element_type=jnp.float32) + b4
    out_ref[...] = out.astype(out_ref.dtype)


def qnetwork_apply(x, kparams, *, out_dtype=jnp.float32,
                   max_single_block_batch=2048):
    """Run the fused MLP.

    x: (batch, STATE_SIZE) float32 or bfloat16 states (raw, unpadded).
    Returns the lane-dense (batch, OUT_PAD) Q slab; columns >= ACTION_SIZE are
    exactly 0.0 (zero-padded fc4 weight/bias), so consumers (TD targets, losses)
    can read the slab directly without a slice.
    """
    batch = x.shape[0]
    operands = (kparams["w1"], kparams["w2"], kparams["w3"], kparams["w4"],
                kparams["b_all"])

    if batch <= max_single_block_batch:
        # Single grid step: weights, biases, x and all activations fit VMEM for
        # every realistic DQN batch -> minimum fixed overhead.
        vmem = pl.BlockSpec(memory_space=pltpu.MemorySpace.VMEM)
        return pl.pallas_call(
            qnetwork_kernel,
            out_shape=jax.ShapeDtypeStruct((batch, OUT_PAD), out_dtype),
            in_specs=[vmem] * 6,
            out_specs=vmem,
        )(x, *operands)

    # Very large batches: exactly 2 "parallel" batch tiles so v7x's two
    # TensorCores each take one step; weights/biases use constant index_maps and
    # stay VMEM-resident across both steps.  (Ragged last tile is handled by
    # Pallas' masked out-of-bounds writes.)
    tile_b = _round_up(pl.cdiv(batch, 2), 16)
    num_tiles = pl.cdiv(batch, tile_b)
    return pl.pallas_call(
        qnetwork_kernel,
        out_shape=jax.ShapeDtypeStruct((batch, OUT_PAD), out_dtype),
        grid=(num_tiles,),
        in_specs=[
            pl.BlockSpec((tile_b, STATE_SIZE), lambda i: (i, 0)),  # x tile
            pl.BlockSpec((STATE_SIZE, H1), lambda i: (0, 0)),      # w1 (resident)
            pl.BlockSpec((H1, H2), lambda i: (0, 0)),              # w2
            pl.BlockSpec((H2, H3), lambda i: (0, 0)),              # w3
            pl.BlockSpec((H3, OUT_PAD), lambda i: (0, 0)),         # w4 (padded N)
            pl.BlockSpec((1, B_TOTAL), lambda i: (0, 0)),          # fused biases
        ],
        out_specs=pl.BlockSpec((tile_b, OUT_PAD), lambda i: (i, 0)),
        compiler_params=pltpu.CompilerParams(
            dimension_semantics=("parallel",)),   # shards across v7x's 2 TCs
    )(x, *operands)


def qnetwork_forward(x, kparams, *, out_dtype=jnp.float32,
                     max_single_block_batch=2048):
    """Module-faithful output: (batch, ACTION_SIZE) Q-values (one slice only)."""
    slab = qnetwork_apply(x, kparams, out_dtype=out_dtype,
                          max_single_block_batch=max_single_block_batch)
    return slab[:, :ACTION_SIZE]


# ----------------------- parameter construction -----------------------------

def xavier_uniform(key, fan_in, fan_out, dtype=jnp.float32):
    """torch.nn.init.xavier_uniform_ equivalent; stored as (in, out) layout."""
    limit = (6.0 / (fan_in + fan_out)) ** 0.5
    return jax.random.uniform(key, (fan_in, fan_out), dtype=dtype,
                              minval=-limit, maxval=limit)


def init_params(key):
    """f32 parameters matching the PyTorch module's init (bias = 0.01)."""
    k1, k2, k3, k4 = jax.random.split(key, 4)
    bias_fill = 0.01
    return {
        "w1": xavier_uniform(k1, STATE_SIZE, H1),
        "b1": jnp.full((1, H1), bias_fill, jnp.float32),
        "w2": xavier_uniform(k2, H1, H2),
        "b2": jnp.full((1, H2), bias_fill, jnp.float32),
        "w3": xavier_uniform(k3, H2, H3),
        "b3": jnp.full((1, H3), bias_fill, jnp.float32),
        "w4": xavier_uniform(k4, H3, ACTION_SIZE),
        "b4": jnp.full((1, ACTION_SIZE), bias_fill, jnp.float32),
    }


def pack_params(p):
    """Pack f32 params into bf16 weights (fc4 zero-padded to 128 cols) + fused f32 bias."""
    w4 = jnp.pad(p["w4"], ((0, 0), (0, OUT_PAD - ACTION_SIZE)))   # zero N cols
    b4 = jnp.pad(p["b4"], ((0, 0), (0, OUT_PAD - ACTION_SIZE)))
    return {
        "w1": p["w1"].astype(jnp.bfloat16),          # (6, 256): K=6 handled by MXU masking
        "w2": p["w2"].astype(jnp.bfloat16),
        "w3": p["w3"].astype(jnp.bfloat16),
        "w4": w4.astype(jnp.bfloat16),
        "b_all": jnp.concatenate([p["b1"], p["b2"], p["b3"], b4],
                                 axis=1).astype(jnp.float32),
    }


# ----------------------------- references -----------------------------------

def reference_forward_f32(x, p):
    """Pure-f32 JAX reference of the PyTorch forward."""
    h = jnp.maximum(x @ p["w1"] + p["b1"], 0.0)
    h = jnp.maximum(h @ p["w2"] + p["b2"], 0.0)
    h = jnp.maximum(h @ p["w3"] + p["b3"], 0.0)
    return h @ p["w4"] + p["b4"]


def reference_forward_kernel_numerics(x, kp):
    """Reference mimicking the kernel numerics (bf16 MXU inputs, f32 accumulate)."""
    b1 = kp["b_all"][:, 0:H1]
    b2 = kp["b_all"][:, H1:H1 + H2]
    b3 = kp["b_all"][:, H1 + H2:H1 + H2 + H3]
    b4 = kp["b_all"][:, H1 + H2 + H3:B_TOTAL]
    mm = lambda a, w: jnp.dot(a.astype(jnp.bfloat16), w,
                              preferred_element_type=jnp.float32)
    h = jnp.maximum(mm(x, kp["w1"]) + b1, 0.0)
    h = jnp.maximum(mm(h, kp["w2"]) + b2, 0.0)
    h = jnp.maximum(mm(h, kp["w3"]) + b3, 0.0)
    return (mm(h, kp["w4"]) + b4)[:, :ACTION_SIZE]


if __name__ == "__main__":
    key = jax.random.PRNGKey(0)
    k_params, k_x1, k_x2 = jax.random.split(key, 3)

    params = init_params(k_params)
    kparams = pack_params(params)

    # --- small acting batch: single-block no-grid path, f32 output ---
    x_small = jax.random.normal(k_x1, (8, STATE_SIZE), dtype=jnp.float32)
    q_small = jax.block_until_ready(qnetwork_forward(x_small, kparams))
    assert q_small.shape == (8, ACTION_SIZE)
    assert jnp.allclose(q_small, reference_forward_kernel_numerics(x_small, kparams),
                        atol=2e-3, rtol=2e-3)
    assert jnp.allclose(q_small, reference_forward_f32(x_small, params),
                        atol=3e-2, rtol=3e-2)

    # --- bf16 lane-dense slab (acting path, halved writeback); padded cols == 0 ---
    slab_bf16 = jax.block_until_ready(
        qnetwork_apply(x_small, kparams, out_dtype=jnp.bfloat16))
    assert slab_bf16.shape == (8, OUT_PAD)
    assert jnp.allclose(slab_bf16[:, ACTION_SIZE:].astype(jnp.float32), 0.0)
    assert jnp.allclose(slab_bf16[:, :ACTION_SIZE].astype(jnp.float32),
                        reference_forward_kernel_numerics(x_small, kparams),
                        atol=2e-2, rtol=2e-2)

    # --- replay batch: force the exactly-2-tile gridded path (one per v7x TC) ---
    x_big = jax.random.normal(k_x2, (384, STATE_SIZE), dtype=jnp.float32)
    q_big = jax.block_until_ready(
        qnetwork_forward(x_big, kparams, max_single_block_batch=128))
    assert q_big.shape == (384, ACTION_SIZE)
    assert jnp.allclose(q_big, reference_forward_kernel_numerics(x_big, kparams),
                        atol=2e-3, rtol=2e-3)
    assert jnp.allclose(q_big, reference_forward_f32(x_big, params),
                        atol=3e-2, rtol=3e-2)

    print("KERNEL_OK")
</pallas_src>

<mosaic_0001>
module attributes {stable_mosaic.version = 11 : i64} {
  func.func @qnetwork_kernel(%arg0: memref<8x6xf32, #tpu.memory_space<vmem>>, %arg1: memref<6x256xbf16, #tpu.memory_space<vmem>>, %arg2: memref<256x256xbf16, #tpu.memory_space<vmem>>, %arg3: memref<256x128xbf16, #tpu.memory_space<vmem>>, %arg4: memref<128x128xbf16, #tpu.memory_space<vmem>>, %arg5: memref<1x768xf32, #tpu.memory_space<vmem>>, %arg6: memref<8x128xf32, #tpu.memory_space<vmem>>) attributes {dimension_semantics = [], scalar_prefetch = 0 : i64, scratch_operands = 0 : i64, tpu.core_type = #tpu.core_type<tc>} {
    %c0 = arith.constant 0 : index
    %c0_0 = arith.constant 0 : index
    %0 = vector.load %arg0[%c0, %c0_0] : memref<8x6xf32, #tpu.memory_space<vmem>>, vector<8x6xf32>
    %1 = arith.truncf %0 : vector<8x6xf32> to vector<8x6xbf16>
    %c0_1 = arith.constant 0 : index
    %c0_2 = arith.constant 0 : index
    %2 = vector.load %arg5[%c0_1, %c0_2] : memref<1x768xf32, #tpu.memory_space<vmem>>, vector<1x256xf32>
    %c0_3 = arith.constant 0 : index
    %c256 = arith.constant 256 : index
    %3 = vector.load %arg5[%c0_3, %c256] : memref<1x768xf32, #tpu.memory_space<vmem>>, vector<1x256xf32>
    %c0_4 = arith.constant 0 : index
    %c512 = arith.constant 512 : index
    %4 = vector.load %arg5[%c0_4, %c512] : memref<1x768xf32, #tpu.memory_space<vmem>>, vector<1x128xf32>
    %c0_5 = arith.constant 0 : index
    %c640 = arith.constant 640 : index
    %5 = vector.load %arg5[%c0_5, %c640] : memref<1x768xf32, #tpu.memory_space<vmem>>, vector<1x128xf32>
    %c0_6 = arith.constant 0 : index
    %c0_7 = arith.constant 0 : index
    %6 = vector.load %arg1[%c0_6, %c0_7] : memref<6x256xbf16, #tpu.memory_space<vmem>>, vector<6x256xbf16>
    %cst = arith.constant dense<0.000000e+00> : vector<8x256xf32>
    %7 = tpu.matmul %1, %6, %cst {dimension_numbers = #tpu.dot_dimension_numbers<[1], [0], [0], [1], [0, 0, 1, 1], [], []>} : vector<8x6xbf16>, vector<6x256xbf16>, vector<8x256xf32> -> vector<8x256xf32>
    %8 = vector.broadcast %2 : vector<1x256xf32> to vector<8x256xf32>
    %9 = arith.addf %7, %8 : vector<8x256xf32>
    %cst_8 = arith.constant 0.000000e+00 : f32
    %10 = vector.broadcast %cst_8 : f32 to vector<8x256xf32>
    %11 = arith.maximumf %9, %10 : vector<8x256xf32>
    %12 = arith.truncf %11 : vector<8x256xf32> to vector<8x256xbf16>
    %c0_9 = arith.constant 0 : index
    %c0_10 = arith.constant 0 : index
    %13 = vector.load %arg2[%c0_9, %c0_10] : memref<256x256xbf16, #tpu.memory_space<vmem>>, vector<256x256xbf16>
    %cst_11 = arith.constant dense<0.000000e+00> : vector<8x256xf32>
    %14 = tpu.matmul %12, %13, %cst_11 {dimension_numbers = #tpu.dot_dimension_numbers<[1], [0], [0], [1], [0, 0, 1, 1], [], []>} : vector<8x256xbf16>, vector<256x256xbf16>, vector<8x256xf32> -> vector<8x256xf32>
    %15 = vector.broadcast %3 : vector<1x256xf32> to vector<8x256xf32>
    %16 = arith.addf %14, %15 : vector<8x256xf32>
    %cst_12 = arith.constant 0.000000e+00 : f32
    %17 = vector.broadcast %cst_12 : f32 to vector<8x256xf32>
    %18 = arith.maximumf %16, %17 : vector<8x256xf32>
    %19 = arith.truncf %18 : vector<8x256xf32> to vector<8x256xbf16>
    %c0_13 = arith.constant 0 : index
    %c0_14 = arith.constant 0 : index
    %20 = vector.load %arg3[%c0_13, %c0_14] : memref<256x128xbf16, #tpu.memory_space<vmem>>, vector<256x128xbf16>
    %cst_15 = arith.constant dense<0.000000e+00> : vector<8x128xf32>
    %21 = tpu.matmul %19, %20, %cst_15 {dimension_numbers = #tpu.dot_dimension_numbers<[1], [0], [0], [1], [0, 0, 1, 1], [], []>} : vector<8x256xbf16>, vector<256x128xbf16>, vector<8x128xf32> -> vector<8x128xf32>
    %22 = vector.broadcast %4 : vector<1x128xf32> to vector<8x128xf32>
    %23 = arith.addf %21, %22 : vector<8x128xf32>
    %cst_16 = arith.constant 0.000000e+00 : f32
    %24 = vector.broadcast %cst_16 : f32 to vector<8x128xf32>
    %25 = arith.maximumf %23, %24 : vector<8x128xf32>
    %26 = arith.truncf %25 : vector<8x128xf32> to vector<8x128xbf16>
    %c0_17 = arith.constant 0 : index
    %c0_18 = arith.constant 0 : index
    %27 = vector.load %arg4[%c0_17, %c0_18] : memref<128x128xbf16, #tpu.memory_space<vmem>>, vector<128x128xbf16>
    %cst_19 = arith.constant dense<0.000000e+00> : vector<8x128xf32>
    %28 = tpu.matmul %26, %27, %cst_19 {dimension_numbers = #tpu.dot_dimension_numbers<[1], [0], [0], [1], [0, 0, 1, 1], [], []>} : vector<8x128xbf16>, vector<128x128xbf16>, vector<8x128xf32> -> vector<8x128xf32>
    %29 = vector.broadcast %5 : vector<1x128xf32> to vector<8x128xf32>
    %30 = arith.addf %28, %29 : vector<8x128xf32>
    %c0_20 = arith.constant 0 : index
    %c0_21 = arith.constant 0 : index
    %31 = vector.load %arg6[%c0_20, %c0_21] : memref<8x128xf32, #tpu.memory_space<vmem>>, vector<8x128xf32>
    tpu.vector_store %arg6[%c0_20, %c0_21], %30 {strides = array<i32>} : memref<8x128xf32, #tpu.memory_space<vmem>>, vector<8x128xf32>,
    return
  }
}

</mosaic_0001>

<bundles_post_ra>
// kernel: tpu_custom_call.1
= control target key start
LH: loop header
LB: loop body
LE: loop exit
PB: predicated region body
PF: predicated region fallthrough
CT: control target
= control target key end

     0   :  { %11 = vsyncpa [#allocation3], 0  ;;  %s1212_s0 = inlined_call_operand.hbm [shape: f32[8,6], index: 0, kind: input, shape index: {}]   ;;  %s1213_s1 = inlined_call_operand.hbm [shape: bf16[6,256], index: 1, kind: input, shape index: {}]   ;;  %s1214_s2 = inlined_call_operand.hbm [shape: bf16[256,256], index: 2, kind: input, shape index: {}]   ;;  %s1215_s3 = inlined_call_operand.hbm [shape: bf16[256,128], index: 3, kind: input, shape index: {}]   ;;  %s1216_s4 = inlined_call_operand.hbm [shape: bf16[128,128], index: 4, kind: input, shape index: {}]   ;;  %s1217_s5 = inlined_call_operand.vmem [shape: f32[1,768], index: 5, kind: input, shape index: {}]   ;;  %s1218_s6 = inlined_call_operand.hbm [shape: f32[8,128], index: 6, kind: output, shape index: {}]  }
   0x1   :  { %12 = vsyncpa [#allocation6], 0 }
   0x2   :  { %13 = vsyncpa [#allocation9], 0 }
   0x3   :  { %14 = vsyncpa [#allocation4], 0  ;;  %s1060_s21 = smov [#allocation5]   ;;  %s1061_s23 = smov [#allocation8]  }
   0x4   :  { %s31_s22 = sshll.u32 %s1060_s21, 4  ;;  %s52_s24 = sshll.u32 %s1061_s23, 4  ;;  %s32_s22 = int_to_ptr.vmem [resolvable:$true] %s31_s22  ;;  %s1108_s24 = int_to_ptr.vmem [resolvable:$true] %s52_s24 }
   0x5   :  { %s920_s27 = scalar_lea.hbm %s1213_s1, 128 }
   0x6   :  { %p921_p0 = scmp.ne.s32.totalorder %s1213_s1, %s920_s27  ;;  %p924_p1 = scmp.lt.u32.totalorder %s920_s27, %s1213_s1 }
   0x8   :  { %p926_p2 = pnand %p924_p1, %p921_p0 }
   0xa   :  { %929 = shalt.err (!%p926_p2)
}
   0xb   :  { %s930_s8 = scalar_lea.vmem %s32_s22, 128  ;;  %p935_p4 = scmp.lt.s32.totalorder %s32_s22, %s32_s22 }
   0xc   :  { %p931_p3 = scmp.ne.s32.totalorder %s32_s22, %s930_s8  ;;  %p936_p5 = scmp.lt.s32.totalorder %s930_s8, %s930_s8 }
   0xe   :  { %p937_p6 = por %p936_p5, %p935_p4 }
  0x10   :  { %p938_p7 = pnand %p937_p6, %p931_p3 }
  0x12   :  { %941 = shalt.err (!%p938_p7)
}
  0x13   :  { %34 = dma.hbm_to_vmem [thread:$0]  %s1213_s1, 128, %s32_s22, [#allocation6]  }
  0x14   :  { %s942_s13 = scalar_lea.hbm %s1215_s3, 2048 }
  0x15   :  { %p943_p8 = scmp.ne.s32.totalorder %s1215_s3, %s942_s13  ;;  %p946_p9 = scmp.lt.u32.totalorder %s942_s13, %s1215_s3 }
  0x17   :  { %p948_p10 = pnand %p946_p9, %p943_p8 }
  0x19   :  { %951 = shalt.err (!%p948_p10)
}
  0x1a   :  { %s952_s18 = scalar_lea.vmem %s1108_s24, 2048  ;;  %p957_p12 = scmp.lt.s32.totalorder %s1108_s24, %s1108_s24 }
  0x1b   :  { %p953_p11 = scmp.ne.s32.totalorder %s1108_s24, %s952_s18  ;;  %p958_p13 = scmp.lt.s32.totalorder %s952_s18, %s952_s18 }
  0x1d   :  { %p959_p0 = por %p958_p13, %p957_p12 }
  0x1f   :  { %p960_p1 = pnand %p959_p0, %p953_p11 }
  0x21   :  { %963 = shalt.err (!%p960_p1)
}
  0x22   :  { %s1062_s1 = smov 64   ;;  %s1063_s19 = smov 4  }
  0x23   :  { %58 = dma.hbm_to_vmem [thread:$0]  %s1215_s3, 2048, %s1108_s24, [#allocation9], %s1062_s1, %s1062_s1, %s1063_s19  }
  0x24   :  { %s1064_s22 = smov [#allocation2]   ;;  %s1065_s25 = smov [#allocation7]  }
  0x25   :  { %s21_s23 = sshll.u32 %s1064_s22, 4  ;;  %s40_s26 = sshll.u32 %s1065_s25, 4  ;;  %s22_s23 = int_to_ptr.vmem [resolvable:$true] %s21_s23  ;;  %s1142_s26 = int_to_ptr.vmem [resolvable:$true] %s40_s26 }
  0x26   :  { %s964_s29 = scalar_lea.hbm %s1212_s0, 128 }
  0x27   :  { %p965_p2 = scmp.ne.s32.totalorder %s1212_s0, %s964_s29  ;;  %p968_p3 = scmp.lt.u32.totalorder %s964_s29, %s1212_s0 }
  0x29   :  { %p970_p4 = pnand %p968_p3, %p965_p2 }
  0x2b   :  { %973 = shalt.err (!%p970_p4)
}
  0x2c   :  { %s974_s3 = scalar_lea.vmem %s22_s23, 128  ;;  %p979_p6 = scmp.lt.s32.totalorder %s22_s23, %s22_s23 }
  0x2d   :  { %p975_p5 = scmp.ne.s32.totalorder %s22_s23, %s974_s3  ;;  %p980_p7 = scmp.lt.s32.totalorder %s974_s3, %s974_s3 }
  0x2f   :  { %p981_p8 = por %p980_p7, %p979_p6 }
  0x31   :  { %p982_p9 = pnand %p981_p8, %p975_p5 }
  0x33   :  { %985 = shalt.err (!%p982_p9)
}
  0x34   :  { %24 = dma.hbm_to_vmem [thread:$0]  %s1212_s0, 128, %s22_s23, [#allocation3]  }
  0x35   :  { %s986_s13 = scalar_lea.hbm %s1214_s2, 4096 }
  0x36   :  { %p987_p10 = scmp.ne.s32.totalorder %s1214_s2, %s986_s13  ;;  %p990_p11 = scmp.lt.u32.totalorder %s986_s13, %s1214_s2 }
  0x38   :  { %p992_p12 = pnand %p990_p11, %p987_p10 }
  0x3a   :  { %995 = shalt.err (!%p992_p12)
}
  0x3b   :  { %s996_s18 = scalar_lea.vmem %s1142_s26, 4096  ;;  %p1001_p0 = scmp.lt.s32.totalorder %s1142_s26, %s1142_s26 }
  0x3c   :  { %p997_p13 = scmp.ne.s32.totalorder %s1142_s26, %s996_s18  ;;  %p1002_p1 = scmp.lt.s32.totalorder %s996_s18, %s996_s18 }
  0x3e   :  { %p1003_p2 = por %p1002_p1, %p1001_p0 }
  0x40   :  { %p1004_p3 = pnand %p1003_p2, %p997_p13 }
  0x42   :  { %1007 = shalt.err (!%p1004_p3)
}
  0x43   :  { %s1066_s0 = smov 128   ;;  %s1067_s20 = smov 8  }
  0x44   :  { %46 = dma.hbm_to_vmem [thread:$0]  %s1214_s2, 4096, %s1142_s26, [#allocation6], %s1066_s0, %s1066_s0, %s1067_s20  }
  0x45   :  { %s1068_s23 = smov [#allocation10]   ;;  %s1008_s29 = scalar_lea.hbm %s1216_s4, 1024 }
  0x46   :  { %s64_s25 = sshll.u32 %s1068_s23, 4  ;;  %p1009_p4 = scmp.ne.s32.totalorder %s1216_s4, %s1008_s29  ;;  %s65_s25 = int_to_ptr.vmem [resolvable:$true] %s64_s25 }
  0x47   :  { %p1012_p5 = scmp.lt.u32.totalorder %s1008_s29, %s1216_s4 }
  0x49   :  { %p1014_p6 = pnand %p1012_p5, %p1009_p4 }
  0x4b   :  { %1017 = shalt.err (!%p1014_p6)
}
  0x4c   :  { %s1018_s3 = scalar_lea.vmem %s65_s25, 1024  ;;  %p1023_p8 = scmp.lt.s32.totalorder %s65_s25, %s65_s25 }
  0x4d   :  { %p1019_p7 = scmp.ne.s32.totalorder %s65_s25, %s1018_s3  ;;  %p1024_p9 = scmp.lt.s32.totalorder %s1018_s3, %s1018_s3 }
  0x4f   :  { %p1025_p10 = por %p1024_p9, %p1023_p8 }
  0x51   :  { %p1026_p11 = pnand %p1025_p10, %p1019_p7 }
  0x53   :  { %1029 = shalt.err (!%p1026_p11)
}
  0x54   :  { %70 = dma.hbm_to_vmem [thread:$0]  %s1216_s4, 1024, %s65_s25, [#allocation9], %s1062_s1, %s1062_s1, %s1063_s19  }
  0x55   :  { %1052 = dma.done.wait [#allocation3], 128  }
  0x56   :  { %1053 = vsyncadd [#allocation3], 4294967168 }
  0x57   :  { %1054 = dma.done.wait [#allocation6], 4224  }
  0x58   :  { %1055 = vsyncadd [#allocation6], 4294963072 }
  0x59   :  { %1056 = dma.done.wait [#allocation9], 3072  }
  0x5a   :  { %1057 = vsyncadd [#allocation9], 4294964224  ;;  %v1069_v0 = vmov 0   ;;  %v95_v1 = vld [vmem:[#allocation5] sm:$0x77]  ;;  %vm116_vm0 = vcmask 1042432   ;;  %v97_v51 = vlaneseq }
  0x5b   :  { %155 = vmatprep.mubr.bf16.mxu0 %v1069_v0  ;;  %v89_v2 = vld [vmem:[#allocation2] sm:$0xff]  ;;  %v721_v3 = vcombine.high %v95_v1, %v95_v1  ;;  %v720_v4 = vcombine.low %v95_v1, %v95_v1  ;;  %v848_v5 = vld [vmem:[#allocation7 + $0x4] ss:$8 sps:$4 sm:$0xff]   ;;  %v850_v6 = vld [vmem:[#allocation7] ss:$8 sps:$4 sm:$0xff]   ;;  %vm112_vm1 = vcmask 48128  }
  0x5c   :  { %v851_v7 = vld [vmem:[#allocation7 + $0x14] ss:$8 sps:$4 sm:$0xff]   ;;  %v90_v9 = vpack.c.bf16 %v89_v2, %v89_v2  ;;  %371 = vmatprep.subr.bf16.mxu1 %v848_v5  ;;  %v853_v10 = vld [vmem:[#allocation7 + $0x10] ss:$8 sps:$4 sm:$0xff]   ;;  %v854_v11 = vld [vmem:[#allocation7 + $0x24] ss:$8 sps:$4 sm:$0xff]  }
  0x5d   :  { %722 = vmatprep.subr.msk.bf16.mxu0 %vm116_vm0, %v721_v3  ;;  %v118_v8 = vsel %vm116_vm0, %v720_v4, 0  ;;  %372 = vmatpush1.bf16.msra.mxu1 %v850_v6  ;;  %v856_v12 = vld [vmem:[#allocation7 + $0x20] ss:$8 sps:$4 sm:$0xff]   ;;  %v857_v13 = vld [vmem:[#allocation7 + $0x34] ss:$8 sps:$4 sm:$0xff]   ;;  %v98_v52 = vshrl.u32 %v97_v51, 7 }
  0x5e   :  { %124 = vmatpush1.bf16.msra.mxu0 %v118_v8  ;;  %373 = vmatprep.subr.bf16.mxu1 %v851_v7  ;;  %v859_v14 = vld [vmem:[#allocation7 + $0x30] ss:$8 sps:$4 sm:$0xff]   ;;  %v860_v15 = vld [vmem:[#allocation7 + $0x44] ss:$8 sps:$4 sm:$0xff]   ;;  %v862_v16 = vld [vmem:[#allocation7 + $0x40] ss:$8 sps:$4 sm:$0xff]  }
  0x5f   :  { %v863_v17 = vld [vmem:[#allocation7 + $0x54] ss:$8 sps:$4 sm:$0xff]   ;;  %v865_v18 = vld [vmem:[#allocation7 + $0x50] ss:$8 sps:$4 sm:$0xff]   ;;  %v866_v19 = vld [vmem:[#allocation7 + $0x64] ss:$8 sps:$4 sm:$0xff]  }
  0x60   :  { %v868_v20 = vld [vmem:[#allocation7 + $0x60] ss:$8 sps:$4 sm:$0xff]   ;;  %v869_v21 = vld [vmem:[#allocation7 + $0x74] ss:$8 sps:$4 sm:$0xff]   ;;  %v871_v22 = vld [vmem:[#allocation7 + $0x70] ss:$8 sps:$4 sm:$0xff]  }
  0x61   :  { %723 = vmatmul.mubr.msk.bf16.vlgmr.msra.gmra.mrb[0].mxu0 %vm112_vm1, %v90_v9  ;;  %374 = vmatpush1.bf16.msra.mxu1 %v853_v10  ;;  %v872_v23 = vld [vmem:[#allocation7 + $0x84] ss:$8 sps:$4 sm:$0xff]   ;;  %v874_v24 = vld [vmem:[#allocation7 + $0x80] ss:$8 sps:$4 sm:$0xff]   ;;  %v875_v25 = vld [vmem:[#allocation7 + $0x94] ss:$8 sps:$4 sm:$0xff]  }
  0x62   :  { %375 = vmatprep.subr.bf16.mxu1 %v854_v11  ;;  %v877_v26 = vld [vmem:[#allocation7 + $0x90] ss:$8 sps:$4 sm:$0xff]   ;;  %v878_v27 = vld [vmem:[#allocation7 + $0xa4] ss:$8 sps:$4 sm:$0xff]   ;;  %v880_v28 = vld [vmem:[#allocation7 + $0xa0] ss:$8 sps:$4 sm:$0xff]  }
  0x63   :  { %v881_v29 = vld [vmem:[#allocation7 + $0xb4] ss:$8 sps:$4 sm:$0xff]   ;;  %v883_v30 = vld [vmem:[#allocation7 + $0xb0] ss:$8 sps:$4 sm:$0xff]   ;;  %v884_v31 = vld [vmem:[#allocation7 + $0xc4] ss:$8 sps:$4 sm:$0xff]  }
  0x64   :  { %v886_v32 = vld [vmem:[#allocation7 + $0xc0] ss:$8 sps:$4 sm:$0xff]   ;;  %v887_v33 = vld [vmem:[#allocation7 + $0xd4] ss:$8 sps:$4 sm:$0xff]   ;;  %v889_v34 = vld [vmem:[#allocation7 + $0xd0] ss:$8 sps:$4 sm:$0xff]  }
  0x65   :  { %376 = vmatpush1.bf16.msra.mxu1 %v856_v12  ;;  %v890_v35 = vld [vmem:[#allocation7 + $0xe4] ss:$8 sps:$4 sm:$0xff]   ;;  %v892_v36 = vld [vmem:[#allocation7 + $0xe0] ss:$8 sps:$4 sm:$0xff]   ;;  %v893_v37 = vld [vmem:[#allocation7 + $0xf4] ss:$8 sps:$4 sm:$0xff]  }
  0x66   :  { %377 = vmatprep.subr.bf16.mxu1 %v857_v13  ;;  %v895_v38 = vld [vmem:[#allocation7 + $0xf0] ss:$8 sps:$4 sm:$0xff]   ;;  %v896_v39 = vld [vmem:[#allocation8 + $0x40] sm:$0xff]   ;;  %v898_v41 = vld [vmem:[#allocation8 + $0x48] sm:$0xff]   ;;  %v99_v53 = vsub.s32 0, %v98_v52  ;;  %v103_v55 = vsub.s32 1, %v98_v52 }
  0x67   :  { %v897_v40 = vld [vmem:[#allocation8] sm:$0xff]   ;;  %782 = vmatprep.subr.bf16.mxu0 %v896_v39  ;;  %v899_v42 = vld [vmem:[#allocation8 + $0x8] sm:$0xff]   ;;  %v900_v43 = vld [vmem:[#allocation8 + $0x50] sm:$0xff]   ;;  %v1070_v8 = vmov 0.0   ;;  %vm1071_vm2 = vmmov 0   ;;  %s1072_s14 = smov [#allocation11]  }
  0x68   :  { %783 = vmatpush3.bf16.msra.mxu0 %v897_v40  ;;  %v901_v44 = vld [vmem:[#allocation8 + $0x10] sm:$0xff]   ;;  %v902_v45 = vld [vmem:[#allocation8 + $0x58] sm:$0xff]   ;;  %v904_v47 = vld [vmem:[#allocation8 + $0x60] sm:$0xff]   ;;  %s709_s15 = sshll.u32 %s1072_s14, 4  ;;  %s710_s15 = int_to_ptr.vmem [resolvable:$true] %s709_s15 }
  0x69   :  { %378 = vmatpush1.bf16.msra.mxu1 %v859_v14  ;;  %784 = vmatprep.subr.bf16.mxu0 %v898_v41  ;;  %v903_v46 = vld [vmem:[#allocation8 + $0x18] sm:$0xff]   ;;  %v905_v48 = vld [vmem:[#allocation8 + $0x20] sm:$0xff]   ;;  %v906_v49 = vld [vmem:[#allocation8 + $0x68] sm:$0xff]   ;;  %s1030_s16 = scalar_lea.vmem %s710_s15, 128  ;;  %p1035_p13 = scmp.lt.s32.totalorder %s710_s15, %s710_s15 }
  0x6a   :  { %379 = vmatprep.subr.bf16.mxu1 %v860_v15  ;;  %v907_v50 = vld [vmem:[#allocation8 + $0x28] sm:$0xff]   ;;  %v91_v54 = vld [vmem:[%s1217_s5] sm:$0x3]  ;;  %v910_v6 = vld [vmem:[#allocation8 + $0x78] sm:$0xff]   ;;  %p1031_p12 = scmp.ne.s32.totalorder %s710_s15, %s1030_s16  ;;  %p1036_p0 = scmp.lt.s32.totalorder %s1030_s16, %s1030_s16 }
  0x6b   :  { %v100_v56 = vrot.slane %v91_v54, %v99_v53  ;;  %v104_v57 = vrot.slane %v91_v54, %v103_v55  ;;  %v908_v4 = vld [vmem:[#allocation8 + $0x70] sm:$0xff]   ;;  %v911_v7 = vld [vmem:[#allocation8 + $0x38] sm:$0xff]  }
  0x6c   :  { %785 = vmatpush3.bf16.msra.mxu0 %v899_v42  ;;  %v909_v5 = vld [vmem:[#allocation8 + $0x30] sm:$0xff]   ;;  %p1037_p1 = por %p1036_p0, %p1035_p13 }
  0x6d   :  { %380 = vmatpush1.bf16.msra.mxu1 %v862_v16  ;;  %786 = vmatprep.subr.bf16.mxu0 %v900_v43  ;;  %v92_v9 = vld [vmem:[%s1217_s5 + $0x2] sm:$0x3]  ;;  %v773_v39 = vld [vmem:[%s1217_s5 + $0x5] ss:$0 sm:$0xff] }
  0x6e   :  { %381 = vmatprep.subr.bf16.mxu1 %v863_v17  ;;  %v204_v10 = vrot.slane %v92_v9, %v99_v53  ;;  %v208_v11 = vrot.slane %v92_v9, %v103_v55  ;;  %p1038_p2 = pnand %p1037_p1, %p1031_p12 }
  0x70   :  { %787 = vmatpush3.bf16.msra.mxu0 %v901_v44 }
  0x71   :  { %382 = vmatpush1.bf16.msra.mxu1 %v865_v18  ;;  %788 = vmatprep.subr.bf16.mxu0 %v902_v45 }
  0x72   :  { %383 = vmatprep.subr.bf16.mxu1 %v866_v19 }
  0x74   :  { %789 = vmatpush3.bf16.msra.mxu0 %v903_v46 }
  0x75   :  { %384 = vmatpush1.bf16.msra.mxu1 %v868_v20  ;;  %790 = vmatprep.subr.bf16.mxu0 %v904_v47 }
  0x76   :  { %385 = vmatprep.subr.bf16.mxu1 %v869_v21  ;;  %v912_v21 = vld [vmem:[#allocation10] sm:$0xff]  }
  0x78   :  { %791 = vmatpush3.bf16.msra.mxu0 %v905_v48 }
  0x79   :  { %386 = vmatpush1.bf16.msra.mxu1 %v871_v22  ;;  %792 = vmatprep.subr.bf16.mxu0 %v906_v49 }
  0x7a   :  { %387 = vmatprep.subr.bf16.mxu1 %v872_v23  ;;  %v913_v23 = vld [vmem:[#allocation10 + $0x8] sm:$0xff]  }
  0x7c   :  { %793 = vmatpush3.bf16.msra.mxu0 %v907_v50 }
  0x7d   :  { %388 = vmatpush1.bf16.msra.mxu1 %v874_v24  ;;  %794 = vmatprep.subr.bf16.mxu0 %v908_v4  ;;  %v914_v24 = vld [vmem:[#allocation10 + $0x10] sm:$0xff]  }
  0x7e   :  { %389 = vmatprep.subr.bf16.mxu1 %v875_v25  ;;  %v915_v25 = vld [vmem:[#allocation10 + $0x18] sm:$0xff]  }
  0x80   :  { %795 = vmatpush3.bf16.msra.mxu0 %v909_v5 }
  0x81   :  { %390 = vmatpush1.bf16.msra.mxu1 %v877_v26  ;;  %796 = vmatprep.subr.bf16.mxu0 %v910_v6  ;;  %v916_v26 = vld [vmem:[#allocation10 + $0x20] sm:$0xff]  }
  0x82   :  { %391 = vmatprep.subr.bf16.mxu1 %v878_v27  ;;  %v917_v27 = vld [vmem:[#allocation10 + $0x28] sm:$0xff]  }
  0x84   :  { %797 = vmatpush3.bf16.msra.mxu0 %v911_v7 }
  0x85   :  { %392 = vmatpush1.bf16.msra.mxu1 %v880_v28  ;;  %813 = vmatprep.subr.bf16.mxu0 %v1070_v8  ;;  %v918_v28 = vld [vmem:[#allocation10 + $0x30] sm:$0xff]  }
  0x86   :  { %393 = vmatprep.subr.bf16.mxu1 %v881_v29  ;;  %v919_v29 = vld [vmem:[#allocation10 + $0x38] sm:$0xff]  }
  0x89   :  { %394 = vmatpush1.bf16.msra.mxu1 %v883_v30 }
  0x8a   :  { %395 = vmatprep.subr.bf16.mxu1 %v884_v31  ;;  %v756_v31 = vld [vmem:[%s1217_s5 + $0x4] ss:$0 sm:$0xff] }
  0x8d   :  { %396 = vmatpush1.bf16.msra.mxu1 %v886_v32 }
  0x8e   :  { %397 = vmatprep.subr.bf16.mxu1 %v887_v33 }
  0x91   :  { %398 = vmatpush1.bf16.msra.mxu1 %v889_v34 }
  0x92   :  { %399 = vmatprep.subr.bf16.mxu1 %v890_v35 }
  0x95   :  { %400 = vmatpush1.bf16.msra.mxu1 %v892_v36 }
  0x96   :  { %401 = vmatprep.subr.bf16.mxu1 %v893_v37 }
  0x99   :  { %402 = vmatpush1.bf16.msra.mxu1 %v895_v38 }
 0x134   :  { %v157_v58 = vpop.f32.mrb[0].mxu0 }
 0x135   :  { %v158_v59 = vadd.f32 %v157_v58, %v100_v56  ;;  %v159_v60 = vpop.f32.mrb[1].mxu0 }
 0x136   :  { %v160_v61 = vadd.f32 %v159_v60, %v104_v57  ;;  %v161_v62 = vpop.f32.mrb[2].mxu0 }
 0x137   :  { %v164_v63 = vmax.f32 %v158_v59, 0.0  ;;  %v162_v0 = vpop.f32.mrb[3].mxu0 }
 0x138   :  { %v165_v1 = vmax.f32 %v160_v61, 0.0 }
 0x139   :  { %v166_v3 = vpack.c.bf16 %v164_v63, %v164_v63 }
 0x13a   :  { %v167_v2 = vpack.c.bf16 %v165_v1, %v165_v1 }
 0x13c   :  { %403 = vmatprep.mubr.bf16.mxu1 %v167_v2 }
 0x13d   :  { %404 = vmatmul.mubr.bf16.vlgmr.msra.gmra.mrb[0].mxu1 %v166_v3 }
 0x210   :  { %v405_v12 = vpop.f32.mrb[0].mxu1 }
 0x211   :  { %v406_v13 = vadd.f32 %v405_v12, %v204_v10  ;;  %v407_v14 = vpop.f32.mrb[1].mxu1 }
 0x212   :  { %v408_v15 = vadd.f32 %v407_v14, %v208_v11  ;;  %v409_v16 = vpop.f32.mrb[2].mxu1 }
 0x213   :  { %v412_v17 = vmax.f32 %v406_v13, 0.0  ;;  %v410_v18 = vpop.f32.mrb[3].mxu1 }
 0x214   :  { %v413_v19 = vmax.f32 %v408_v15, 0.0 }
 0x215   :  { %v414_v22 = vpack.c.bf16 %v412_v17, %v412_v17 }
 0x216   :  { %v415_v20 = vpack.c.bf16 %v413_v19, %v413_v19 }
 0x218   :  { %582 = vmatprep.mubr.bf16.mxu0 %v415_v20 }
 0x219   :  { %583 = vmatmul.mubr.bf16.vlgmr.msra.gmra.mrb[4].mxu0 %v414_v22 }
 0x21a   :  { %814 = vmatpush3.bf16.msra.mxu0 %v912_v21  ;;  %829 = vmatprep.mubr.msk.bf16.mxu0 %vm1071_vm2, %v1070_v8 }
 0x21b   :  { %815 = vmatprep.subr.bf16.mxu0 %v1070_v8 }
 0x21e   :  { %816 = vmatpush3.bf16.msra.mxu0 %v913_v23 }
 0x21f   :  { %817 = vmatprep.subr.bf16.mxu0 %v1070_v8 }
 0x222   :  { %818 = vmatpush3.bf16.msra.mxu0 %v914_v24 }
 0x223   :  { %819 = vmatprep.subr.bf16.mxu0 %v1070_v8 }
 0x226   :  { %820 = vmatpush3.bf16.msra.mxu0 %v915_v25 }
 0x227   :  { %821 = vmatprep.subr.bf16.mxu0 %v1070_v8 }
 0x22a   :  { %822 = vmatpush3.bf16.msra.mxu0 %v916_v26 }
 0x22b   :  { %823 = vmatprep.subr.bf16.mxu0 %v1070_v8 }
 0x22e   :  { %824 = vmatpush3.bf16.msra.mxu0 %v917_v27 }
 0x22f   :  { %825 = vmatprep.subr.bf16.mxu0 %v1070_v8 }
 0x232   :  { %826 = vmatpush3.bf16.msra.mxu0 %v918_v28 }
 0x233   :  { %827 = vmatprep.subr.bf16.mxu0 %v1070_v8 }
 0x236   :  { %828 = vmatpush3.bf16.msra.mxu0 %v919_v29 }
 0x2ec   :  { %v798_v30 = vpop.f32.mrb[4].mxu0 }
 0x2ed   :  { %v799_v32 = vpop.f32.mrb[5].mxu0 }
 0x2ee   :  { %v800_v33 = vadd.f32 %v799_v32, %v798_v30  ;;  %v801_v34 = vpop.f32.mrb[6].mxu0 }
 0x2ef   :  { %v802_v35 = vpop.f32.mrb[7].mxu0 }
 0x2f0   :  { %v585_v36 = vadd.f32 %v800_v33, %v756_v31 }
 0x2f2   :  { %v590_v37 = vmax.f32 %v585_v36, 0.0 }
 0x2f4   :  { %v591_v38 = vpack.c.bf16 %v590_v37, %v590_v37 }
 0x2f6   :  { %830 = vmatmul.mubr.bf16.vlgmr.msra.gmra.mrb[8].mxu0 %v591_v38 }
 0x3c9   :  { %v696_v40 = vpop.f32.mrb[8].mxu0 }
 0x3ca   :  { %v697_v41 = vadd.f32 %v773_v39, %v696_v40  ;;  %v831_v42 = vpop.f32.mrb[9].mxu0 }
 0x3cb   :  { %v699_v43 = vpop.f32.mrb[10].mxu0 }
 0x3cc   :  { %702 = vst [vmem:[#allocation11] sm:$0xff] %v697_v41  ;;  %v832_v44 = vpop.f32.mrb[11].mxu0 }
 0x3cd   :  { %1041 = shalt.err (!%p1038_p2)
}
 0x3ce   :  { %s1042_s5 = scalar_lea.hbm %s1218_s6, 128 }
 0x3cf   :  { %p1043_p3 = scmp.ne.s32.totalorder %s1218_s6, %s1042_s5  ;;  %p1046_p4 = scmp.lt.u32.totalorder %s1042_s5, %s1218_s6 }
 0x3d1   :  { %p1048_p5 = pnand %p1046_p4, %p1043_p3 }
 0x3d3   :  { %1051 = shalt.err (!%p1048_p5)
}
 0x3d4   :  { %712 = dma.vmem_to_hbm [thread:$0]  %s710_s15, 128, %s1218_s6, [#allocation4]  }
 0x3d5   :  { %1058 = dma.done.wait [#allocation4], 128  }
 0x3d6   :  { %1059 = vsyncadd [#allocation4], 4294967168 }
 0x3d7   :  { %716 = vsyncpa [#allocation3], 1 }
 0x3d8   :  { %717 = vsyncpa [#allocation6], 1 }
 0x3d9   :  { %718 = vsyncpa [#allocation9], 1 }
 0x3da   :  { %719 = vsyncpa [#allocation4], 1 }

</bundles_post_ra>
